<compile_context>
chip_gen: v5e
topology: v5e:2x2
jax: 0.10.0
libtpu: 0.0.40
codegen_flags: <defaults>
</compile_context>

<pallas_src>
import math

import jax
import jax.numpy as jnp
from jax.experimental import pallas as pl
from jax.experimental.pallas import tpu as pltpu


def _round_up(x: int, m: int) -> int:
    return ((x + m - 1) // m) * m


def _vmem_capacity_bytes() -> int:
    """Physical VMEM per TensorCore; conservative fallback if query fails."""
    try:
        info = pltpu.get_tpu_info()
        cap = getattr(info, "vmem_capacity_bytes", None)
        if cap:
            return int(cap)
    except Exception:
        pass
    return 64 * 1024 * 1024  # v7x physical; safe lower bound for v5e/v6e too


def _make_swiglu_kernel(tf: int, use_scratch: bool):
    """Kernel closure over the TF tile and accumulator placement."""

    def kernel(x_ref, w13_ref, w2_ref, o_ref, *scratch):
        acc_ref = scratch[0] if use_scratch else o_ref
        f = pl.program_id(1)

        @pl.when(f == 0)
        def _init():
            acc_ref[...] = jnp.zeros_like(acc_ref)

        # Fused gate projections: x (TM, d_model) @ w13 (d_model, 2*TF).
        # The w13 operand interleaves the W1^T and W3^T tiles for this f step,
        # so one MXU dot produces both h1 and h3 (lane-aligned slices).
        h13 = jnp.dot(x_ref[...], w13_ref[...],
                      preferred_element_type=jnp.float32)
        h1 = h13[:, :tf]
        h3 = h13[:, tf:]

        # SiLU gate in f32 (sigmoid -> EUP slot, elementwise -> VPU).
        g = (h1 * jax.nn.sigmoid(h1) * h3).astype(w2_ref.dtype)

        # Partial down-projection: g (TM, TF) @ W2^T tile (TF, d_model),
        # accumulated in f32 across the d_ff grid axis.
        acc_ref[...] += jnp.dot(g, w2_ref[...],
                                preferred_element_type=jnp.float32)

        if use_scratch:
            @pl.when(f == pl.num_programs(1) - 1)
            def _finalize():
                o_ref[...] = acc_ref[...].astype(o_ref.dtype)

    return kernel


def swiglu(x: jax.Array, w1: jax.Array, w2: jax.Array, w3: jax.Array,
           *, tile_m: int = 512, tile_f: int = 512) -> jax.Array:
    """x: (..., d_model); w1,w3: (d_ff, d_model); w2: (d_model, d_ff)."""
    d_ff, d_model = w1.shape
    assert w3.shape == (d_ff, d_model), w3.shape
    assert w2.shape == (d_model, d_ff), w2.shape
    assert x.shape[-1] == d_model, x.shape

    orig_shape = x.shape
    x2d = x.reshape(-1, d_model)
    n = x2d.shape[0]

    dtype = x.dtype
    in_dsz = jnp.dtype(dtype).itemsize
    out_dsz = in_dsz
    # f32 outputs accumulate directly into the resident output block;
    # narrower outputs keep a separate f32 VMEM accumulator.
    use_scratch = dtype != jnp.dtype(jnp.float32)

    # Sublane-dense row tiles: multiple of 8 for f32, 16 for bf16.
    row_align = 16 if dtype == jnp.dtype(jnp.bfloat16) else 8

    # ---- tile selection -----------------------------------------------------
    # d_ff padded to a multiple of 128 (lane-dense); TF must divide it.
    d_ff_pad = _round_up(d_ff, 128)
    tf_candidates = []
    c = min(_round_up(tile_f, 128), d_ff_pad)
    while c >= 128:
        if c % 128 == 0 and d_ff_pad % c == 0:
            tf_candidates.append(c)
        c //= 2
    if not tf_candidates or tf_candidates[-1] != 128:
        tf_candidates.append(128)

    tm = min(_round_up(tile_m, row_align), _round_up(n, row_align))

    vmem_cap = _vmem_capacity_bytes()
    vmem_limit = int(vmem_cap * 0.85)        # explicit scoped-VMEM limit
    budget = vmem_limit - (2 << 20)          # headroom for internal scratch

    def vmem_need(tm_, tf_):
        x_b = 2 * tm_ * d_model * in_dsz            # double-buffered x tile
        w13_b = 2 * d_model * (2 * tf_) * in_dsz    # double-buffered W1|W3
        w2_b = 2 * tf_ * d_model * in_dsz           # double-buffered W2^T
        o_b = 2 * tm_ * d_model * out_dsz           # double-buffered out
        acc_b = tm_ * d_model * 4 if use_scratch else 0
        return x_b + w13_b + w2_b + o_b + acc_b

    tf_idx = 0
    tf = tf_candidates[tf_idx]
    while vmem_need(tm, tf) > budget:
        if tf_idx + 1 < len(tf_candidates):
            tf_idx += 1
            tf = tf_candidates[tf_idx]          # shrink TF first
        elif tm > row_align:
            tm = max(row_align, _round_up(tm // 2, row_align))
        else:
            break

    n_pad = _round_up(n, tm)
    if n_pad != n:
        x2d = jnp.pad(x2d, ((0, n_pad - n), (0, 0)))

    # ---- weight layout plumbing (once per call; zero-cost relative to GEMMs)
    w1_t = w1.T.astype(dtype)                  # (d_model, d_ff)
    w3_t = w3.T.astype(dtype)                  # (d_model, d_ff)
    w2_t = w2.T.astype(dtype)                  # (d_ff,  d_model)
    pad_f = d_ff_pad - d_ff
    if pad_f:
        w1_t = jnp.pad(w1_t, ((0, 0), (0, pad_f)))
        w3_t = jnp.pad(w3_t, ((0, 0), (0, pad_f)))
        w2_t = jnp.pad(w2_t, ((0, pad_f), (0, 0)))
    n_tf = d_ff_pad // tf
    # Interleave W1^T / W3^T at TF granularity: block f of the combined matrix
    # holds [W1^T tile f | W3^T tile f] -> one (d_model, 2*TF) DMA + one dot.
    w13 = jnp.stack(
        [w1_t.reshape(d_model, n_tf, tf), w3_t.reshape(d_model, n_tf, tf)],
        axis=2).reshape(d_model, 2 * d_ff_pad)

    grid_m = n_pad // tm
    grid = (grid_m, n_tf)

    cost = pl.CostEstimate(
        flops=6 * n_pad * d_model * d_ff_pad,              # three matmuls
        transcendentals=n_pad * d_ff_pad,                  # sigmoid
        bytes_accessed=(x2d.size * in_dsz + n_pad * d_model * out_dsz
                        + grid_m * (w13.size + w2_t.size) * in_dsz),
    )

    scratch_shapes = ([pltpu.VMEM((tm, d_model), jnp.float32)]
                      if use_scratch else [])

    grid_spec = pltpu.PrefetchScalarGridSpec(
        num_scalar_prefetch=0,
        grid=grid,
        in_specs=[
            pl.BlockSpec((tm, d_model), lambda i, f: (i, 0)),      # x rows
            pl.BlockSpec((d_model, 2 * tf), lambda i, f: (0, f)),  # W1|W3 tile
            pl.BlockSpec((tf, d_model), lambda i, f: (f, 0)),      # W2^T tile
        ],
        out_specs=pl.BlockSpec((tm, d_model), lambda i, f: (i, 0)),
        scratch_shapes=scratch_shapes,
    )

    out = pl.pallas_call(
        _make_swiglu_kernel(tf, use_scratch),
        out_shape=jax.ShapeDtypeStruct((n_pad, d_model), dtype),
        grid_spec=grid_spec,
        compiler_params=pltpu.CompilerParams(
            dimension_semantics=("parallel", "arbitrary"),
            vmem_limit_bytes=vmem_limit,
        ),
        cost_estimate=cost,
    )(x2d, w13, w2_t)

    return out[:n].reshape(*orig_shape[:-1], d_model)


def _init_linear_weight(key, out_features: int, in_features: int,
                        dtype=jnp.float32) -> jax.Array:
    # Matches nn.init.trunc_normal_(mean=0, std=std, a=-3*std, b=3*std).
    std = math.sqrt(2.0 / (in_features + out_features))
    w = jax.random.truncated_normal(
        key, lower=-3.0, upper=3.0,
        shape=(out_features, in_features), dtype=jnp.float32) * std
    return w.astype(dtype)


if __name__ == "__main__":
    d_model, d_ff = 128, 256
    batch, seq = 2, 8

    key = jax.random.PRNGKey(0)
    k_x, k1, k2, k3 = jax.random.split(key, 4)

    x = jax.random.normal(k_x, (batch, seq, d_model), dtype=jnp.float32)
    w1 = _init_linear_weight(k1, d_ff, d_model)      # (d_ff, d_model)
    w2 = _init_linear_weight(k2, d_model, d_ff)      # (d_model, d_ff)
    w3 = _init_linear_weight(k3, d_ff, d_model)      # (d_ff, d_model)

    out = swiglu(x, w1, w2, w3)
    out = jax.block_until_ready(out)

    # Pure-JAX reference: W2(SiLU(W1 x) * W3 x)
    h1 = x @ w1.T
    h3 = x @ w3.T
    ref = (h1 * jax.nn.sigmoid(h1) * h3) @ w2.T

    assert out.shape == (batch, seq, d_model), out.shape
    assert jnp.allclose(out, ref, atol=1e-2, rtol=1e-2), (
        float(jnp.max(jnp.abs(out - ref))))

    print("KERNEL_OK")
</pallas_src>

<mosaic_0001>
module attributes {stable_mosaic.version = 11 : i64} {
  func.func @kernel(%arg0: i32, %arg1: i32, %arg2: memref<16x128xf32, #tpu.memory_space<vmem>>, %arg3: memref<128x512xf32, #tpu.memory_space<vmem>>, %arg4: memref<256x128xf32, #tpu.memory_space<vmem>>, %arg5: memref<16x128xf32, #tpu.memory_space<vmem>>) attributes {dimension_semantics = [#tpu.dimension_semantics<parallel>, #tpu.dimension_semantics<arbitrary>], iteration_bounds = array<i64: 1, 1>, scalar_prefetch = 0 : i64, scratch_operands = 0 : i64, tpu.core_type = #tpu.core_type<tc>, window_params = [{transform_indices = @transform_0, window_bounds = array<i64: 16, 128>}, {transform_indices = @transform_1, window_bounds = array<i64: 128, 512>}, {transform_indices = @transform_2, window_bounds = array<i64: 256, 128>}, {transform_indices = @transform_3, window_bounds = array<i64: 16, 128>}]} {
    %c0_i32 = arith.constant 0 : i32
    %0 = arith.cmpi eq, %arg1, %c0_i32 : i32
    %1 = arith.extui %0 : i1 to i32
    %c0_i32_0 = arith.constant 0 : i32
    %2 = arith.cmpi ne, %1, %c0_i32_0 : i32
    scf.if %2 {
      %cst_12 = arith.constant 0.000000e+00 : f32
      %20 = vector.broadcast %cst_12 : f32 to vector<16x128xf32>
      %c0_13 = arith.constant 0 : index
      %c0_14 = arith.constant 0 : index
      %21 = vector.load %arg5[%c0_13, %c0_14] : memref<16x128xf32, #tpu.memory_space<vmem>>, vector<16x128xf32>
      tpu.vector_store %arg5[%c0_13, %c0_14], %20 {strides = array<i32>} : memref<16x128xf32, #tpu.memory_space<vmem>>, vector<16x128xf32>,
    } else {
    }
    %c0 = arith.constant 0 : index
    %c0_1 = arith.constant 0 : index
    %3 = vector.load %arg2[%c0, %c0_1] : memref<16x128xf32, #tpu.memory_space<vmem>>, vector<16x128xf32>
    %c0_2 = arith.constant 0 : index
    %c0_3 = arith.constant 0 : index
    %4 = vector.load %arg3[%c0_2, %c0_3] : memref<128x512xf32, #tpu.memory_space<vmem>>, vector<128x512xf32>
    %cst = arith.constant dense<0.000000e+00> : vector<16x512xf32>
    %5 = tpu.matmul %3, %4, %cst {dimension_numbers = #tpu.dot_dimension_numbers<[1], [0], [0], [1], [0, 0, 1, 1], [], []>} : vector<16x128xf32>, vector<128x512xf32>, vector<16x512xf32> -> vector<16x512xf32>
    %6 = vector.extract_strided_slice %5 {offsets = [0, 0], sizes = [16, 256], strides = [1, 1]} : vector<16x512xf32> to vector<16x256xf32>
    %7 = vector.extract_strided_slice %5 {offsets = [0, 256], sizes = [16, 256], strides = [1, 1]} : vector<16x512xf32> to vector<16x256xf32>
    %8 = arith.negf %6 : vector<16x256xf32>
    %9 = math.exp %8 : vector<16x256xf32>
    %cst_4 = arith.constant 1.000000e+00 : f32
    %10 = vector.broadcast %cst_4 : f32 to vector<16x256xf32>
    %11 = arith.addf %10, %9 : vector<16x256xf32>
    %12 = arith.divf %10, %11 : vector<16x256xf32>
    %13 = arith.mulf %6, %12 : vector<16x256xf32>
    %14 = arith.mulf %13, %7 : vector<16x256xf32>
    %c0_5 = arith.constant 0 : index
    %c0_6 = arith.constant 0 : index
    %15 = vector.load %arg5[%c0_5, %c0_6] : memref<16x128xf32, #tpu.memory_space<vmem>>, vector<16x128xf32>
    %c0_7 = arith.constant 0 : index
    %c0_8 = arith.constant 0 : index
    %16 = vector.load %arg4[%c0_7, %c0_8] : memref<256x128xf32, #tpu.memory_space<vmem>>, vector<256x128xf32>
    %cst_9 = arith.constant dense<0.000000e+00> : vector<16x128xf32>
    %17 = tpu.matmul %14, %16, %cst_9 {dimension_numbers = #tpu.dot_dimension_numbers<[1], [0], [0], [1], [0, 0, 1, 1], [], []>} : vector<16x256xf32>, vector<256x128xf32>, vector<16x128xf32> -> vector<16x128xf32>
    %18 = arith.addf %15, %17 : vector<16x128xf32>
    %c0_10 = arith.constant 0 : index
    %c0_11 = arith.constant 0 : index
    %19 = vector.load %arg5[%c0_10, %c0_11] : memref<16x128xf32, #tpu.memory_space<vmem>>, vector<16x128xf32>
    tpu.vector_store %arg5[%c0_10, %c0_11], %18 {strides = array<i32>} : memref<16x128xf32, #tpu.memory_space<vmem>>, vector<16x128xf32>,
    return
  }
  func.func @transform_0(%arg0: i32, %arg1: i32) -> (i32, i32) {
    %c0_i32 = arith.constant 0 : i32
    %c0_i32_0 = arith.constant 0 : i32
    return %arg0, %c0_i32 : i32, i32
  }
  func.func @transform_1(%arg0: i32, %arg1: i32) -> (i32, i32) {
    %c0_i32 = arith.constant 0 : i32
    %c0_i32_0 = arith.constant 0 : i32
    return %c0_i32, %arg1 : i32, i32
  }
  func.func @transform_2(%arg0: i32, %arg1: i32) -> (i32, i32) {
    %c0_i32 = arith.constant 0 : i32
    %c0_i32_0 = arith.constant 0 : i32
    return %arg1, %c0_i32 : i32, i32
  }
  func.func @transform_3(%arg0: i32, %arg1: i32) -> (i32, i32) {
    %c0_i32 = arith.constant 0 : i32
    %c0_i32_0 = arith.constant 0 : i32
    return %arg0, %c0_i32 : i32, i32
  }
}

</mosaic_0001>

<bundles_post_ra>
// kernel: tpu_custom_call.1
= control target key start
LH: loop header
LB: loop body
LE: loop exit
PB: predicated region body
PF: predicated region fallthrough
CT: control target
= control target key end

     0   :  { %8 = vsyncpa [#allocation3], 0  ;;  %s642_s0 = inlined_call_operand.hbm [shape: f32[16,128], index: 0, kind: input, shape index: {}]   ;;  %s643_s1 = inlined_call_operand.hbm [shape: f32[128,512], index: 1, kind: input, shape index: {}]   ;;  %s644_s2 = inlined_call_operand.hbm [shape: f32[256,128], index: 2, kind: input, shape index: {}]   ;;  %s645_s3 = inlined_call_operand.hbm [shape: f32[16,128], index: 3, kind: output, shape index: {}]  }
   0x1   :  { %9 = vsyncpa [#allocation6], 0  ;;  %s28_s14 = sshll.u32 %s643_s1, 4  ;;  %s29_s14 = int_to_ptr.hbm [resolvable:$true] %s28_s14 }
   0x2   :  { %10 = vsyncpa [#allocation4], 0  ;;  %s577_s15 = smov [#allocation5]   ;;  %s15_s19 = sshll.u32 %s642_s0, 4  ;;  %s16_s19 = int_to_ptr.hbm [resolvable:$true] %s15_s19 }
   0x3   :  { %s30_s16 = sshll.u32 %s577_s15, 4  ;;  %s578_s20 = smov 512   ;;  %s31_s16 = int_to_ptr.vmem [resolvable:$true] %s30_s16 }
   0x4   :  { %s579_s21 = smov 32   ;;  %s580_s22 = smov [#allocation2]  }
   0x5   :  { %36 = dma.hbm_to_vmem [thread:$0]  %s29_s14, 8192, %s31_s16, [#allocation6], %s578_s20, %s578_s20, %s579_s21  }
   0x6   :  { %s17_s23 = sshll.u32 %s580_s22, 4  ;;  %s581_s24 = smov 128   ;;  %s18_s23 = int_to_ptr.vmem [resolvable:$true] %s17_s23 }
   0x7   :  { %s582_s25 = smov 8   ;;  %s41_s27 = sshll.u32 %s644_s2, 4  ;;  %s42_s27 = int_to_ptr.hbm [resolvable:$true] %s41_s27 }
   0x8   :  { %23 = dma.hbm_to_vmem [thread:$0]  %s16_s19, 256, %s18_s23, [#allocation3], %s581_s24, %s581_s24, %s582_s25  }
   0x9   :  { %s583_s28 = smov [#allocation7]  }
   0xa   :  { %s43_s0 = sshll.u32 %s583_s28, 4  ;;  %s44_s0 = int_to_ptr.vmem [resolvable:$true] %s43_s0 }
   0xb   :  { %49 = dma.hbm_to_vmem [thread:$0]  %s42_s27, 4096, %s44_s0, [#allocation6], %s581_s24, %s581_s24, %s582_s25  }
   0xc   :  { %571 = dma.done.wait [#allocation3], 256  }
   0xd   :  { %572 = vsyncadd [#allocation3], 4294967040 }
   0xe   :  { %573 = dma.done.wait [#allocation6], 12288  }
   0xf   :  { %574 = vsyncadd [#allocation6], 4294955008  ;;  %v130_v0 = vld [vmem:[#allocation5 + $0x1e0] sm:$0xff]  ;;  %v131_v1 = vld [vmem:[#allocation5 + $0x1e8] sm:$0xff]  ;;  %s584_s2 = smov [#allocation8]   ;;  %s400_s5 = sshll.u32 %s645_s3, 4  ;;  %s401_s5 = int_to_ptr.hbm [resolvable:$true] %s400_s5 }
  0x10   :  { %v126_v2 = vld [vmem:[#allocation5 + $0x1c0] sm:$0xff]  ;;  %134 = vmatpush.msra.mxu0 %v130_v0  ;;  %157 = vmatpush.msra.mxu1 %v131_v1  ;;  %v127_v3 = vld [vmem:[#allocation5 + $0x1c8] sm:$0xff]  ;;  %v132_v12 = vld [vmem:[#allocation5 + $0x1f0] sm:$0xff]  ;;  %s398_s29 = sshll.u32 %s584_s2, 4  ;;  %s399_s29 = int_to_ptr.vmem [resolvable:$true] %s398_s29 }
  0x11   :  { %v122_v4 = vld [vmem:[#allocation5 + $0x1a0] sm:$0xff]  ;;  %v123_v5 = vld [vmem:[#allocation5 + $0x1a8] sm:$0xff]  ;;  %v133_v14 = vld [vmem:[#allocation5 + $0x1f8] sm:$0xff]  ;;  %180 = vmatpush.msra.mxu2 %v132_v12 }
  0x12   :  { %135 = vmatpush.msra.mxu0 %v126_v2  ;;  %158 = vmatpush.msra.mxu1 %v127_v3  ;;  %v118_v6 = vld [vmem:[#allocation5 + $0x180] sm:$0xff]  ;;  %v119_v7 = vld [vmem:[#allocation5 + $0x188] sm:$0xff]  ;;  %v128_v16 = vld [vmem:[#allocation5 + $0x1d0] sm:$0xff] }
  0x13   :  { %v114_v8 = vld [vmem:[#allocation5 + $0x160] sm:$0xff]  ;;  %v115_v9 = vld [vmem:[#allocation5 + $0x168] sm:$0xff]  ;;  %203 = vmatpush.msra.mxu3 %v133_v14  ;;  %v129_v17 = vld [vmem:[#allocation5 + $0x1d8] sm:$0xff]  ;;  %181 = vmatpush.msra.mxu2 %v128_v16 }
  0x14   :  { %136 = vmatpush.msra.mxu0 %v122_v4  ;;  %159 = vmatpush.msra.mxu1 %v123_v5  ;;  %v110_v10 = vld [vmem:[#allocation5 + $0x140] sm:$0xff]  ;;  %v111_v11 = vld [vmem:[#allocation5 + $0x148] sm:$0xff]  ;;  %v124_v18 = vld [vmem:[#allocation5 + $0x1b0] sm:$0xff] }
  0x15   :  { %v106_v13 = vld [vmem:[#allocation5 + $0x120] sm:$0xff]  ;;  %v107_v15 = vld [vmem:[#allocation5 + $0x128] sm:$0xff]  ;;  %v125_v19 = vld [vmem:[#allocation5 + $0x1b8] sm:$0xff]  ;;  %204 = vmatpush.msra.mxu3 %v129_v17  ;;  %182 = vmatpush.msra.mxu2 %v124_v18 }
  0x16   :  { %137 = vmatpush.msra.mxu0 %v118_v6  ;;  %160 = vmatpush.msra.mxu1 %v119_v7  ;;  %v102_v20 = vld [vmem:[#allocation5 + $0x100] sm:$0xff]  ;;  %v103_v21 = vld [vmem:[#allocation5 + $0x108] sm:$0xff]  ;;  %v120_v22 = vld [vmem:[#allocation5 + $0x190] sm:$0xff] }
  0x17   :  { %v121_v23 = vld [vmem:[#allocation5 + $0x198] sm:$0xff]  ;;  %v98_v24 = vld [vmem:[#allocation5 + $0xe0] sm:$0xff]  ;;  %v99_v25 = vld [vmem:[#allocation5 + $0xe8] sm:$0xff]  ;;  %205 = vmatpush.msra.mxu3 %v125_v19  ;;  %183 = vmatpush.msra.mxu2 %v120_v22 }
  0x18   :  { %138 = vmatpush.msra.mxu0 %v114_v8  ;;  %161 = vmatpush.msra.mxu1 %v115_v9  ;;  %v116_v26 = vld [vmem:[#allocation5 + $0x170] sm:$0xff]  ;;  %v117_v27 = vld [vmem:[#allocation5 + $0x178] sm:$0xff]  ;;  %v94_v28 = vld [vmem:[#allocation5 + $0xc0] sm:$0xff] }
  0x19   :  { %v95_v29 = vld [vmem:[#allocation5 + $0xc8] sm:$0xff]  ;;  %206 = vmatpush.msra.mxu3 %v121_v23  ;;  %v112_v30 = vld [vmem:[#allocation5 + $0x150] sm:$0xff]  ;;  %v113_v31 = vld [vmem:[#allocation5 + $0x158] sm:$0xff]  ;;  %184 = vmatpush.msra.mxu2 %v116_v26 }
  0x1a   :  { %139 = vmatpush.msra.mxu0 %v110_v10  ;;  %162 = vmatpush.msra.mxu1 %v111_v11  ;;  %v90_v32 = vld [vmem:[#allocation5 + $0xa0] sm:$0xff]  ;;  %v91_v33 = vld [vmem:[#allocation5 + $0xa8] sm:$0xff]  ;;  %v108_v34 = vld [vmem:[#allocation5 + $0x130] sm:$0xff] }
  0x1b   :  { %207 = vmatpush.msra.mxu3 %v117_v27  ;;  %v109_v35 = vld [vmem:[#allocation5 + $0x138] sm:$0xff]  ;;  %v86_v36 = vld [vmem:[#allocation5 + $0x80] sm:$0xff]  ;;  %v87_v37 = vld [vmem:[#allocation5 + $0x88] sm:$0xff]  ;;  %185 = vmatpush.msra.mxu2 %v112_v30 }
  0x1c   :  { %140 = vmatpush.msra.mxu0 %v106_v13  ;;  %163 = vmatpush.msra.mxu1 %v107_v15  ;;  %v104_v38 = vld [vmem:[#allocation5 + $0x110] sm:$0xff]  ;;  %v105_v39 = vld [vmem:[#allocation5 + $0x118] sm:$0xff]  ;;  %v82_v40 = vld [vmem:[#allocation5 + $0x60] sm:$0xff] }
  0x1d   :  { %208 = vmatpush.msra.mxu3 %v113_v31  ;;  %v83_v41 = vld [vmem:[#allocation5 + $0x68] sm:$0xff]  ;;  %186 = vmatpush.msra.mxu2 %v108_v34  ;;  %v100_v42 = vld [vmem:[#allocation5 + $0xf0] sm:$0xff]  ;;  %v101_v43 = vld [vmem:[#allocation5 + $0xf8] sm:$0xff] }
  0x1e   :  { %141 = vmatpush.msra.mxu0 %v102_v20  ;;  %164 = vmatpush.msra.mxu1 %v103_v21  ;;  %v78_v44 = vld [vmem:[#allocation5 + $0x40] sm:$0xff]  ;;  %v79_v45 = vld [vmem:[#allocation5 + $0x48] sm:$0xff]  ;;  %v96_v46 = vld [vmem:[#allocation5 + $0xd0] sm:$0xff] }
  0x1f   :  { %209 = vmatpush.msra.mxu3 %v109_v35  ;;  %187 = vmatpush.msra.mxu2 %v104_v38  ;;  %v97_v47 = vld [vmem:[#allocation5 + $0xd8] sm:$0xff]  ;;  %v74_v48 = vld [vmem:[#allocation5 + $0x20] sm:$0xff]  ;;  %v75_v49 = vld [vmem:[#allocation5 + $0x28] sm:$0xff] }
  0x20   :  { %142 = vmatpush.msra.mxu0 %v98_v24  ;;  %165 = vmatpush.msra.mxu1 %v99_v25  ;;  %v92_v50 = vld [vmem:[#allocation5 + $0xb0] sm:$0xff]  ;;  %v93_v51 = vld [vmem:[#allocation5 + $0xb8] sm:$0xff]  ;;  %v70_v52 = vld [vmem:[#allocation5] sm:$0xff] }
  0x21   :  { %210 = vmatpush.msra.mxu3 %v105_v39  ;;  %188 = vmatpush.msra.mxu2 %v100_v42  ;;  %v71_v53 = vld [vmem:[#allocation5 + $0x8] sm:$0xff]  ;;  %v68_v54 = vld [vmem:[#allocation2] sm:$0xff]  ;;  %v89_v56 = vld [vmem:[#allocation5 + $0x98] sm:$0xff] }
  0x22   :  { %143 = vmatpush.msra.mxu0 %v94_v28  ;;  %166 = vmatpush.msra.mxu1 %v95_v29  ;;  %v88_v55 = vld [vmem:[#allocation5 + $0x90] sm:$0xff]  ;;  %v85_v58 = vld [vmem:[#allocation5 + $0x78] sm:$0xff]  ;;  %v325_v6 = vld [vmem:[#allocation7 + $0x68] sm:$0xff] }
  0x23   :  { %211 = vmatpush.msra.mxu3 %v101_v43  ;;  %189 = vmatpush.msra.mxu2 %v96_v46  ;;  %v84_v57 = vld [vmem:[#allocation5 + $0x70] sm:$0xff]  ;;  %v81_v60 = vld [vmem:[#allocation5 + $0x58] sm:$0xff]  ;;  %v341_v7 = vld [vmem:[#allocation7 + $0xe8] sm:$0xff] }
  0x24   :  { %144 = vmatpush.msra.mxu0 %v90_v32  ;;  %167 = vmatpush.msra.mxu1 %v91_v33  ;;  %v80_v59 = vld [vmem:[#allocation5 + $0x50] sm:$0xff]  ;;  %v77_v62 = vld [vmem:[#allocation5 + $0x38] sm:$0xff]  ;;  %v324_v8 = vld [vmem:[#allocation7 + $0x60] sm:$0xff] }
  0x25   :  { %212 = vmatpush.msra.mxu3 %v97_v47  ;;  %190 = vmatpush.msra.mxu2 %v92_v50  ;;  %v76_v61 = vld [vmem:[#allocation5 + $0x30] sm:$0xff]  ;;  %v69_v63 = vld [vmem:[#allocation2 + $0x8] sm:$0xff]  ;;  %v340_v9 = vld [vmem:[#allocation7 + $0xe0] sm:$0xff] }
  0x26   :  { %145 = vmatpush.msra.mxu0 %v86_v36  ;;  %168 = vmatpush.msra.mxu1 %v87_v37  ;;  %v72_v0 = vld [vmem:[#allocation5 + $0x10] sm:$0xff]  ;;  %v73_v1 = vld [vmem:[#allocation5 + $0x18] sm:$0xff]  ;;  %v321_v14 = vld [vmem:[#allocation7 + $0x48] sm:$0xff] }
  0x27   :  { %213 = vmatpush.msra.mxu3 %v93_v51  ;;  %191 = vmatpush.msra.mxu2 %v88_v55  ;;  %v327_v2 = vld [vmem:[#allocation7 + $0x78] sm:$0xff]  ;;  %v326_v4 = vld [vmem:[#allocation7 + $0x70] sm:$0xff]  ;;  %v337_v15 = vld [vmem:[#allocation7 + $0xc8] sm:$0xff] }
  0x28   :  { %146 = vmatpush.msra.mxu0 %v82_v40  ;;  %169 = vmatpush.msra.mxu1 %v83_v41  ;;  %v343_v3 = vld [vmem:[#allocation7 + $0xf8] sm:$0xff]  ;;  %v342_v5 = vld [vmem:[#allocation7 + $0xf0] sm:$0xff]  ;;  %v320_v16 = vld [vmem:[#allocation7 + $0x40] sm:$0xff] }
  0x29   :  { %214 = vmatpush.msra.mxu3 %v89_v56  ;;  %192 = vmatpush.msra.mxu2 %v84_v57  ;;  %v323_v10 = vld [vmem:[#allocation7 + $0x58] sm:$0xff]  ;;  %v322_v12 = vld [vmem:[#allocation7 + $0x50] sm:$0xff]  ;;  %v336_v17 = vld [vmem:[#allocation7 + $0xc0] sm:$0xff] }
  0x2a   :  { %147 = vmatpush.msra.mxu0 %v78_v44  ;;  %170 = vmatpush.msra.mxu1 %v79_v45  ;;  %v339_v11 = vld [vmem:[#allocation7 + $0xd8] sm:$0xff]  ;;  %v338_v13 = vld [vmem:[#allocation7 + $0xd0] sm:$0xff]  ;;  %v317_v22 = vld [vmem:[#allocation7 + $0x28] sm:$0xff] }
  0x2b   :  { %215 = vmatpush.msra.mxu3 %v85_v58  ;;  %193 = vmatpush.msra.mxu2 %v80_v59  ;;  %v319_v18 = vld [vmem:[#allocation7 + $0x38] sm:$0xff]  ;;  %v318_v20 = vld [vmem:[#allocation7 + $0x30] sm:$0xff]  ;;  %v333_v23 = vld [vmem:[#allocation7 + $0xa8] sm:$0xff] }
  0x2c   :  { %148 = vmatpush.msra.mxu0 %v74_v48  ;;  %171 = vmatpush.msra.mxu1 %v75_v49  ;;  %v335_v19 = vld [vmem:[#allocation7 + $0xb8] sm:$0xff]  ;;  %v334_v21 = vld [vmem:[#allocation7 + $0xb0] sm:$0xff]  ;;  %v316_v24 = vld [vmem:[#allocation7 + $0x20] sm:$0xff] }
  0x2d   :  { %216 = vmatpush.msra.mxu3 %v81_v60  ;;  %194 = vmatpush.msra.mxu2 %v76_v61  ;;  %v332_v25 = vld [vmem:[#allocation7 + $0xa0] sm:$0xff]  ;;  %v315_v26 = vld [vmem:[#allocation7 + $0x18] sm:$0xff]  ;;  %v314_v28 = vld [vmem:[#allocation7 + $0x10] sm:$0xff] }
  0x2e   :  { %149 = vmatpush.msra.mxu0 %v70_v52  ;;  %172 = vmatpush.msra.mxu1 %v71_v53  ;;  %v331_v27 = vld [vmem:[#allocation7 + $0x98] sm:$0xff]  ;;  %v330_v29 = vld [vmem:[#allocation7 + $0x90] sm:$0xff]  ;;  %v313_v34 = vld [vmem:[#allocation7 + $0x8] sm:$0xff] }
  0x2f   :  { %150 = vmatmul.f32.vlgmr.msra.gmra.mxu0 %v68_v54  ;;  %173 = vmatmul.f32.vlgmr.msra.gmra.mxu1 %v68_v54  ;;  %v329_v35 = vld [vmem:[#allocation7 + $0x88] sm:$0xff]  ;;  %v312_v36 = vld [vmem:[#allocation7] sm:$0xff] }
  0x30   :  { %217 = vmatpush.msra.mxu3 %v77_v62  ;;  %195 = vmatpush.msra.mxu2 %v72_v0  ;;  %v328_v37 = vld [vmem:[#allocation7 + $0x80] sm:$0xff] }
  0x31   :  { %196 = vmatmul.f32.vlgmr.msra.gmra.mxu2 %v68_v54  ;;  %344 = vmatpush.msrb.mxu0 %v327_v2 }
  0x32   :  { %218 = vmatpush.msra.mxu3 %v73_v1  ;;  %367 = vmatpush.msrb.mxu1 %v343_v3 }
  0x33   :  { %219 = vmatmul.f32.vlgmr.msra.gmra.mxu3 %v68_v54  ;;  %418 = vmatpush.msrb.mxu2 %v327_v2 }
  0x34   :  { %434 = vmatpush.msrb.mxu3 %v343_v3  ;;  %345 = vmatpush.msrb.mxu0 %v326_v4 }
  0x35   :  { %368 = vmatpush.msrb.mxu1 %v342_v5  ;;  %419 = vmatpush.msrb.mxu2 %v326_v4 }
  0x36   :  { %435 = vmatpush.msrb.mxu3 %v342_v5  ;;  %346 = vmatpush.msrb.mxu0 %v325_v6 }
  0x37   :  { %153 = vmatmul.f32.gmra.mxu0 %v69_v63  ;;  %176 = vmatmul.f32.gmra.mxu1 %v69_v63 }
  0x38   :  { %369 = vmatpush.msrb.mxu1 %v341_v7  ;;  %420 = vmatpush.msrb.mxu2 %v325_v6 }
  0x39   :  { %199 = vmatmul.f32.gmra.mxu2 %v69_v63  ;;  %436 = vmatpush.msrb.mxu3 %v341_v7 }
  0x3a   :  { %347 = vmatpush.msrb.mxu0 %v324_v8  ;;  %370 = vmatpush.msrb.mxu1 %v340_v9 }
  0x3b   :  { %222 = vmatmul.f32.gmra.mxu3 %v69_v63  ;;  %421 = vmatpush.msrb.mxu2 %v324_v8 }
  0x3c   :  { %437 = vmatpush.msrb.mxu3 %v340_v9  ;;  %348 = vmatpush.msrb.mxu0 %v323_v10 }
  0x3d   :  { %371 = vmatpush.msrb.mxu1 %v339_v11  ;;  %422 = vmatpush.msrb.mxu2 %v323_v10 }
  0x3e   :  { %438 = vmatpush.msrb.mxu3 %v339_v11  ;;  %349 = vmatpush.msrb.mxu0 %v322_v12 }
  0x3f   :  { %372 = vmatpush.msrb.mxu1 %v338_v13  ;;  %423 = vmatpush.msrb.mxu2 %v322_v12 }
  0x40   :  { %439 = vmatpush.msrb.mxu3 %v338_v13  ;;  %350 = vmatpush.msrb.mxu0 %v321_v14 }
  0x41   :  { %373 = vmatpush.msrb.mxu1 %v337_v15  ;;  %424 = vmatpush.msrb.mxu2 %v321_v14 }
  0x42   :  { %440 = vmatpush.msrb.mxu3 %v337_v15  ;;  %351 = vmatpush.msrb.mxu0 %v320_v16 }
  0x43   :  { %374 = vmatpush.msrb.mxu1 %v336_v17  ;;  %425 = vmatpush.msrb.mxu2 %v320_v16 }
  0x44   :  { %441 = vmatpush.msrb.mxu3 %v336_v17  ;;  %352 = vmatpush.msrb.mxu0 %v319_v18 }
  0x45   :  { %375 = vmatpush.msrb.mxu1 %v335_v19  ;;  %426 = vmatpush.msrb.mxu2 %v319_v18 }
  0x46   :  { %442 = vmatpush.msrb.mxu3 %v335_v19  ;;  %353 = vmatpush.msrb.mxu0 %v318_v20 }
  0x47   :  { %376 = vmatpush.msrb.mxu1 %v334_v21  ;;  %427 = vmatpush.msrb.mxu2 %v318_v20 }
  0x48   :  { %443 = vmatpush.msrb.mxu3 %v334_v21  ;;  %354 = vmatpush.msrb.mxu0 %v317_v22 }
  0x49   :  { %377 = vmatpush.msrb.mxu1 %v333_v23  ;;  %428 = vmatpush.msrb.mxu2 %v317_v22 }
  0x4a   :  { %444 = vmatpush.msrb.mxu3 %v333_v23  ;;  %355 = vmatpush.msrb.mxu0 %v316_v24 }
  0x4b   :  { %378 = vmatpush.msrb.mxu1 %v332_v25  ;;  %429 = vmatpush.msrb.mxu2 %v316_v24 }
  0x4c   :  { %445 = vmatpush.msrb.mxu3 %v332_v25  ;;  %356 = vmatpush.msrb.mxu0 %v315_v26 }
  0x4d   :  { %379 = vmatpush.msrb.mxu1 %v331_v27  ;;  %430 = vmatpush.msrb.mxu2 %v315_v26 }
  0x4e   :  { %446 = vmatpush.msrb.mxu3 %v331_v27  ;;  %357 = vmatpush.msrb.mxu0 %v314_v28 }
  0x4f   :  { %380 = vmatpush.msrb.mxu1 %v330_v29  ;;  %431 = vmatpush.msrb.mxu2 %v314_v28 }
  0x50   :  { %447 = vmatpush.msrb.mxu3 %v330_v29  ;;  %358 = vmatpush.msrb.mxu0 %v313_v34 }
  0x51   :  { %381 = vmatpush.msrb.mxu1 %v329_v35  ;;  %432 = vmatpush.msrb.mxu2 %v313_v34 }
  0x52   :  { %448 = vmatpush.msrb.mxu3 %v329_v35  ;;  %359 = vmatpush.msrb.mxu0 %v312_v36 }
  0x53   :  { %382 = vmatpush.msrb.mxu1 %v328_v37  ;;  %433 = vmatpush.msrb.mxu2 %v312_v36 }
  0x54   :  { %449 = vmatpush.msrb.mxu3 %v328_v37 }
  0xac   :  { %v620_v30 = vpop.f32.mrf.mxu0  ;;  %v622_v31 = vpop.f32.mrf.mxu1 }
  0xad   :  { %v414_v32 = vmul.f32 -1.442695, %v620_v30  ;;  %v415_v33 = vmul.f32 -1.442695, %v622_v31 }
  0xaf   :  { %459 = vpow2.f32 %v414_v32 }
  0xb0   :  { %461 = vpow2.f32 %v415_v33 }
  0xb4   :  { %v626_v38 = vpop.f32.mrf.mxu0  ;;  %v628_v39 = vpop.f32.mrf.mxu1 }
  0xb5   :  { %v460_v40 = vpop.eup %459  ;;  %v416_v41 = vmul.f32 -1.442695, %v626_v38  ;;  %v417_v44 = vmul.f32 -1.442695, %v628_v39  ;;  %v197_v2 = vpop.f32.mrf.mxu2 }
  0xb6   :  { %v462_v42 = vpop.eup %461  ;;  %v238_v43 = vadd.f32 1.0, %v460_v40  ;;  %v220_v12 = vpop.f32.mrf.mxu3 }
  0xb7   :  { %v239_v45 = vadd.f32 1.0, %v462_v42  ;;  %463 = vpow2.f32 %v416_v41 }
  0xb8   :  { %465 = vrcp.f32 %v238_v43  ;;  %v251_v55 = vand.u32 2147483647, %v238_v43  ;;  %v253_v56 = vand.u32 2147483648, %v238_v43  ;;  %vm247_vm2 = vweird.f32 %v238_v43 }
  0xb9   :  { %467 = vrcp.f32 %v239_v45  ;;  %v268_v59 = vand.u32 2147483648, %v239_v45  ;;  %v266_v61 = vand.u32 2147483647, %v239_v45  ;;  %vm262_vm4 = vweird.f32 %v239_v45 }
  0xba   :  { %469 = vpow2.f32 %v417_v44  ;;  %v254_v0 = vor.u32 1.1754944e-38, %v253_v56  ;;  %vm252_vm5 = vcmp.eq.f32.partialorder %v251_v55, 8.507059e+37 }
  0xbb   :  { %v269_v4 = vor.u32 1.1754944e-38, %v268_v59  ;;  %vm267_vm7 = vcmp.eq.f32.partialorder %v266_v61, 8.507059e+37 }
  0xbd   :  { %v464_v46 = vpop.eup %463  ;;  %v200_v29 = vpop.f32.mrf.mxu2 }
  0xbe   :  { %v466_v47 = vpop.eup %465  ;;  %v240_v48 = vadd.f32 1.0, %v464_v46  ;;  %v223_v35 = vpop.f32.mrf.mxu3 }
  0xbf   :  { %v468_v49 = vpop.eup %467  ;;  %v243_v50 = vmul.f32 %v466_v47, %v238_v43  ;;  %vm248_vm0 = vweird.f32 %v466_v47 }
  0xc0   :  { %v470_v51 = vpop.eup %469  ;;  %v258_v52 = vmul.f32 %v468_v49, %v239_v45  ;;  %471 = vrcp.f32 %v240_v48  ;;  %vm263_vm1 = vweird.f32 %v468_v49  ;;  %vm249_vm3 = vmor %vm247_vm2, %vm248_vm0  ;;  %v283_v14 = vand.u32 2147483648, %v240_v48 }
  0xc1   :  { %v244_v53 = vsub.f32 1.0, %v243_v50  ;;  %v241_v54 = vadd.f32 1.0, %v470_v51  ;;  %vm264_vm6 = vmor %vm262_vm4, %vm263_vm1  ;;  %v281_v17 = vand.u32 2147483647, %v240_v48  ;;  %vm277_vm9 = vweird.f32 %v240_v48 }
  0xc2   :  { %v259_v57 = vsub.f32 1.0, %v258_v52  ;;  %v284_v23 = vor.u32 1.1754944e-38, %v283_v14 }
  0xc3   :  { %v245_v58 = vmul.f32 %v466_v47, %v244_v53  ;;  %473 = vrcp.f32 %v241_v54  ;;  %v298_v22 = vand.u32 2147483648, %v241_v54  ;;  %v296_v25 = vand.u32 2147483647, %v241_v54 }
  0xc4   :  { %v260_v60 = vmul.f32 %v468_v49, %v259_v57  ;;  %vm282_vm12 = vcmp.eq.f32.partialorder %v281_v17, 8.507059e+37  ;;  %vm292_vm13 = vweird.f32 %v241_v54 }
  0xc5   :  { %v246_v62 = vadd.f32 %v466_v47, %v245_v58  ;;  %vm297_vm15 = vcmp.eq.f32.partialorder %v296_v25, 8.507059e+37 }
  0xc6   :  { %v472_v63 = vpop.eup %471  ;;  %v261_v1 = vadd.f32 %v468_v49, %v260_v60 }
  0xc7   :  { %v250_v3 = vsel %vm249_vm3, %v466_v47, %v246_v62  ;;  %v273_v5 = vmul.f32 %v472_v63, %v240_v48  ;;  %vm278_vm8 = vweird.f32 %v472_v63 }
  0xc8   :  { %v255_v6 = vsel %vm252_vm5, %v254_v0, %v250_v3  ;;  %v265_v7 = vsel %vm264_vm6, %v468_v49, %v261_v1  ;;  %vm279_vm10 = vmor %vm277_vm9, %vm278_vm8 }
  0xc9   :  { %v474_v8 = vpop.eup %473  ;;  %v302_v9 = vmul.f32 %v255_v6, %v620_v30  ;;  %v270_v10 = vsel %vm267_vm7, %v269_v4, %v265_v7  ;;  %v274_v11 = vsub.f32 1.0, %v273_v5 }
  0xca   :  { %v303_v13 = vmul.f32 %v270_v10, %v622_v31  ;;  %v288_v15 = vmul.f32 %v474_v8, %v241_v54  ;;  %vm293_vm11 = vweird.f32 %v474_v8  ;;  %v299_v31 = vor.u32 1.1754944e-38, %v298_v22 }
  0xcb   :  { %v275_v16 = vmul.f32 %v472_v63, %v274_v11  ;;  %v306_v18 = vmul.f32 %v302_v9, %v197_v2  ;;  %vm294_vm14 = vmor %vm292_vm13, %vm293_vm11 }
  0xcc   :  { %v289_v19 = vsub.f32 1.0, %v288_v15  ;;  %v307_v20 = vmul.f32 %v303_v13, %v220_v12 }
  0xcd   :  { %v276_v21 = vadd.f32 %v472_v63, %v275_v16  ;;  %360 = vmatmul.f32.vlgmr.msrb.gmra.mxu0 %v306_v18 }
  0xce   :  { %v290_v24 = vmul.f32 %v474_v8, %v289_v19  ;;  %383 = vmatmul.f32.vlgmr.msrb.gmra.mxu1 %v307_v20 }
  0xcf   :  { %v280_v26 = vsel %vm279_vm10, %v472_v63, %v276_v21 }
  0xd0   :  { %v285_v27 = vsel %vm282_vm12, %v284_v23, %v280_v26  ;;  %v291_v28 = vadd.f32 %v474_v8, %v290_v24 }
  0xd1   :  { %v304_v30 = vmul.f32 %v285_v27, %v626_v38 }
  0xd2   :  { %v295_v32 = vsel %vm294_vm14, %v474_v8, %v291_v28 }
  0xd3   :  { %v300_v33 = vsel %vm297_vm15, %v299_v31, %v295_v32  ;;  %v308_v34 = vmul.f32 %v304_v30, %v200_v29 }
  0xd4   :  { %v305_v36 = vmul.f32 %v300_v33, %v628_v39 }
  0xd5   :  { %363 = vmatmul.f32.vlgmr.msrb.gmra.mxu2 %v308_v34 }
  0xd6   :  { %v309_v37 = vmul.f32 %v305_v36, %v223_v35 }
  0xd8   :  { %386 = vmatmul.f32.vlgmr.msrb.gmra.mxu3 %v309_v37 }
 0x14a   :  { %v361_v40 = vpop.f32.mrf.mxu0 }
 0x14b   :  { %v384_v41 = vpop.f32.mrf.mxu1 }
 0x14c   :  { %v385_v42 = vadd.f32 %v384_v41, %v361_v40 }
 0x14e   :  { %392 = vst [vmem:[#allocation8] sm:$0xff] %v385_v42 }
 0x158   :  { %v364_v43 = vpop.f32.mrf.mxu2 }
 0x15b   :  { %v387_v44 = vpop.f32.mrf.mxu3 }
 0x15c   :  { %v388_v38 = vadd.f32 %v387_v44, %v364_v43 }
 0x15e   :  { %393 = vst [vmem:[#allocation8 + $0x8] sm:$0xff] %v388_v38 }
 0x15f   :  { %406 = dma.vmem_to_hbm [thread:$0]  %s399_s29, 256, %s401_s5, [#allocation4], %s581_s24, %s581_s24, %s582_s25  }
 0x160   :  { %575 = dma.done.wait [#allocation4], 256  }
 0x161   :  { %576 = vsyncadd [#allocation4], 4294967040 }
 0x162   :  { %411 = vsyncpa [#allocation3], 1 }
 0x163   :  { %412 = vsyncpa [#allocation6], 1 }
 0x164   :  { %413 = vsyncpa [#allocation4], 1 }

</bundles_post_ra>
